<compile_context>
chip_gen: v6e
topology: v6e:2x2x1
jax: 0.10.0
libtpu: 0.0.40
codegen_flags: <defaults>
</compile_context>

<pallas_src>
import functools

import jax
import jax.numpy as jnp
from jax.experimental import pallas as pl
from jax.experimental.pallas import tpu as pltpu


def _mean_pool_kernel(x_ref, o_ref, acc_ref, *, inv_seq_len, tail_valid):
    """x_ref: (bt, st, ht) input tile; o_ref: (bt, ht); acc_ref: (bt, ht) f32 scratch."""
    k = pl.program_id(2)                      # seq (reduction) step
    last = pl.num_programs(2) - 1
    block_s = x_ref.shape[1]

    @pl.when(k == 0)
    def _init():
        acc_ref[...] = jnp.zeros_like(acc_ref)

    if tail_valid == block_s:
        # seq_len divides the seq tile: single unmasked hot-loop body.
        acc_ref[...] += jnp.sum(x_ref[...].astype(jnp.float32), axis=1)
    else:
        # Main (unmasked) branch for all full seq blocks.
        @pl.when(k != last)
        def _main():
            acc_ref[...] += jnp.sum(x_ref[...].astype(jnp.float32), axis=1)

        # Masked tail branch: only the last seq block pays iota/cmp/select.
        @pl.when(k == last)
        def _tail():
            x = x_ref[...].astype(jnp.float32)
            row = jax.lax.broadcasted_iota(jnp.int32, (1, block_s, 1), 1)
            x = jnp.where(row < tail_valid, x, 0.0)
            acc_ref[...] += jnp.sum(x, axis=1)

    @pl.when(k == last)
    def _finalize():
        # Scale by the TRUE sequence length; single cast to the output dtype.
        o_ref[...] = (acc_ref[...] * inv_seq_len).astype(o_ref.dtype)


def _tpu_vmem_and_cores():
    """Best-effort hardware query; falls back to conservative defaults."""
    vmem_cap = 128 * 1024 * 1024
    num_cores = 1
    try:
        info = pltpu.get_tpu_info()
        vmem_cap = int(getattr(info, "vmem_capacity_bytes", vmem_cap))
        num_cores = int(getattr(info, "num_cores", num_cores))
    except Exception:
        pass
    # Heuristic: 64 MiB per-TC VMEM => v7x-like part with 2 TensorCores per chip.
    if num_cores < 2 and vmem_cap <= 96 * 1024 * 1024:
        num_cores = 2
    return vmem_cap, num_cores


def sentence_embedding_head(encoder_output, *, block_b=None, block_s=None, block_h=None):
    """Mean pooling over dim=1 of [batch, seq_len, hidden] -> [batch, hidden]."""
    b, s, h = encoder_output.shape
    dtype = encoder_output.dtype
    itemsize = jnp.dtype(dtype).itemsize

    vmem_cap, num_cores = _tpu_vmem_and_cores()

    # Dtype-aware sublane packing: 8 rows for f32, 16 for bf16, 32 for int8/fp8.
    pack = max(1, 4 // itemsize)
    sub = 8 * pack

    # Generation-aware scoped-VMEM budget (leave headroom under the physical cap),
    # weighted so double-buffered inputs + the f32 cast temp of sub-f32 inputs fit.
    if vmem_cap <= 96 * 1024 * 1024:          # v7x-like: 64 MiB per TensorCore
        usable = 44 * 1024 * 1024
    else:                                      # v5e / v6e: 128 MiB VMEM
        usable = 64 * 1024 * 1024
    per_block_weight = 2 + (4 // itemsize if itemsize < 4 else 1)
    target_in_block_bytes = usable // per_block_weight

    # Batch tile: packed-sublane-dense rows per block (or the whole batch if smaller).
    bt = block_b if block_b is not None else min(b, sub)

    # Hidden tile: keep ht == h (contiguous DMA runs) unless we must split.
    if block_h is not None:
        ht = block_h
    else:
        ht = h
        b_tiles = pl.cdiv(b, bt)
        # (a) v7x megacore: guarantee >=2 parallel output tiles so both TCs get work.
        if num_cores >= 2 and b_tiles < num_cores and h % 256 == 0:
            ht = h // 2
        # (b) hidden alone blows the block budget: shrink ht to lane-dense 128-multiples.
        if bt * sub * ht * itemsize > target_in_block_bytes and h % 128 == 0:
            max_ht = (target_in_block_bytes // max(1, bt * sub * itemsize)) // 128 * 128
            ht = max(128, min(ht, int(max_ht)))

    # Sequence (reduction) tile: as large as the per-buffer budget allows,
    # rounded to the packed-sublane multiple.
    if block_s is not None:
        st = block_s
    else:
        st_cap = max(sub, target_in_block_bytes // max(1, bt * ht * itemsize))
        st = s if s <= st_cap else max(sub, (int(st_cap) // sub) * sub)

    grid = (pl.cdiv(b, bt), pl.cdiv(h, ht), pl.cdiv(s, st))
    n_seq_blocks = grid[2]
    tail_valid = s - (n_seq_blocks - 1) * st   # valid rows in the last seq block

    # Scoped-VMEM limit derived from the ACTUAL chosen blocks (double-buffered inputs,
    # f32 cast temporary for sub-f32 inputs, double-buffered output, accumulator).
    in_block_bytes = bt * st * ht * itemsize
    out_block_bytes = bt * ht * itemsize
    acc_bytes = bt * ht * 4
    temp_bytes = bt * st * ht * 4 if itemsize < 4 else 0
    est_vmem = 2 * in_block_bytes + temp_bytes + 2 * out_block_bytes + acc_bytes
    headroom = 4 * 1024 * 1024
    phys_ceiling = max(vmem_cap - 8 * 1024 * 1024, 32 * 1024 * 1024)
    vmem_limit = int(min(max(est_vmem + headroom, 16 * 1024 * 1024), phys_ceiling))

    kernel = functools.partial(
        _mean_pool_kernel, inv_seq_len=float(1.0 / s), tail_valid=int(tail_valid)
    )

    cost = pl.CostEstimate(
        flops=int(b * s * h),
        transcendentals=0,
        bytes_accessed=int(b * s * h * itemsize + b * h * itemsize),
    )

    return pl.pallas_call(
        kernel,
        out_shape=jax.ShapeDtypeStruct((b, h), dtype),
        grid_spec=pltpu.PrefetchScalarGridSpec(
            num_scalar_prefetch=0,
            grid=grid,
            in_specs=[pl.BlockSpec((bt, st, ht), lambda i, j, k: (i, k, j))],
            out_specs=pl.BlockSpec((bt, ht), lambda i, j, k: (i, j)),
            scratch_shapes=[pltpu.VMEM((bt, ht), jnp.float32)],
        ),
        compiler_params=pltpu.CompilerParams(
            dimension_semantics=("parallel", "parallel", "arbitrary"),
            vmem_limit_bytes=vmem_limit,
        ),
        cost_estimate=cost,
    )(encoder_output)


if __name__ == "__main__":
    key = jax.random.PRNGKey(0)

    # Small demo shape consistent with the module's forward (f32, full-block path).
    batch, seq_len, hidden = 2, 8, 32
    encoder_output = jax.random.normal(key, (batch, seq_len, hidden), dtype=jnp.float32)
    out = jax.block_until_ready(sentence_embedding_head(encoder_output))
    ref = jnp.mean(encoder_output, axis=1)
    assert out.shape == (batch, hidden)
    assert jnp.allclose(out, ref, atol=1e-5, rtol=1e-5)

    # Tiled-reduction + hoisted tail-mask path (seq not a multiple of the seq tile).
    x2 = jax.random.normal(jax.random.fold_in(key, 1), (4, 12, 32), dtype=jnp.float32)
    out2 = jax.block_until_ready(sentence_embedding_head(x2, block_s=8))
    ref2 = jnp.mean(x2, axis=1)
    assert out2.shape == (4, 32)
    assert jnp.allclose(out2, ref2, atol=1e-5, rtol=1e-5)

    # bf16 path (dtype-aware sublane packing; f32 accumulation inside the kernel).
    x3 = jax.random.normal(jax.random.fold_in(key, 2), (4, 16, 256)).astype(jnp.bfloat16)
    out3 = jax.block_until_ready(sentence_embedding_head(x3))
    ref3 = jnp.mean(x3.astype(jnp.float32), axis=1).astype(jnp.bfloat16)
    assert out3.shape == (4, 256)
    assert jnp.allclose(out3.astype(jnp.float32), ref3.astype(jnp.float32),
                        atol=2e-2, rtol=5e-2)

    print("KERNEL_OK")
</pallas_src>

<mosaic_0001>
module attributes {stable_mosaic.version = 11 : i64} {
  func.func @_mean_pool_kernel(%arg0: i32, %arg1: i32, %arg2: i32, %arg3: memref<2x8x32xf32, #tpu.memory_space<vmem>>, %arg4: memref<2x32xf32, #tpu.memory_space<vmem>>, %arg5: memref<2x32xf32, #tpu.memory_space<vmem>>) attributes {dimension_semantics = [#tpu.dimension_semantics<parallel>, #tpu.dimension_semantics<parallel>, #tpu.dimension_semantics<arbitrary>], iteration_bounds = array<i64: 1, 1, 1>, scalar_prefetch = 0 : i64, scratch_operands = 1 : i64, tpu.core_type = #tpu.core_type<tc>, window_params = [{transform_indices = @transform_0, window_bounds = array<i64: 2, 8, 32>}, {transform_indices = @transform_1, window_bounds = array<i64: 2, 32>}]} {
    %c0_i32 = arith.constant 0 : i32
    %0 = arith.cmpi eq, %arg2, %c0_i32 : i32
    %1 = arith.extui %0 : i1 to i32
    %c0_i32_0 = arith.constant 0 : i32
    %2 = arith.cmpi ne, %1, %c0_i32_0 : i32
    scf.if %2 {
      %cst_9 = arith.constant 0.000000e+00 : f32
      %11 = vector.broadcast %cst_9 : f32 to vector<2x32xf32>
      %c0_10 = arith.constant 0 : index
      %c0_11 = arith.constant 0 : index
      %12 = vector.load %arg5[%c0_10, %c0_11] : memref<2x32xf32, #tpu.memory_space<vmem>>, vector<2x32xf32>
      tpu.vector_store %arg5[%c0_10, %c0_11], %11 {strides = array<i32>} : memref<2x32xf32, #tpu.memory_space<vmem>>, vector<2x32xf32>,
    } else {
    }
    %c0 = arith.constant 0 : index
    %c0_1 = arith.constant 0 : index
    %3 = vector.load %arg5[%c0, %c0_1] : memref<2x32xf32, #tpu.memory_space<vmem>>, vector<2x32xf32>
    %c0_2 = arith.constant 0 : index
    %c0_3 = arith.constant 0 : index
    %c0_4 = arith.constant 0 : index
    %4 = vector.load %arg3[%c0_2, %c0_3, %c0_4] : memref<2x8x32xf32, #tpu.memory_space<vmem>>, vector<2x8x32xf32>
    %cst = arith.constant dense<0.000000e+00> : vector<2x32xf32>
    %5 = vector.multi_reduction <add>, %4, %cst [1] : vector<2x8x32xf32> to vector<2x32xf32>
    %6 = arith.addf %3, %5 : vector<2x32xf32>
    %c0_5 = arith.constant 0 : index
    %c0_6 = arith.constant 0 : index
    %7 = vector.load %arg5[%c0_5, %c0_6] : memref<2x32xf32, #tpu.memory_space<vmem>>, vector<2x32xf32>
    tpu.vector_store %arg5[%c0_5, %c0_6], %6 {strides = array<i32>} : memref<2x32xf32, #tpu.memory_space<vmem>>, vector<2x32xf32>,
    %c0_i32_7 = arith.constant 0 : i32
    %8 = arith.cmpi eq, %arg2, %c0_i32_7 : i32
    %9 = arith.extui %8 : i1 to i32
    %c0_i32_8 = arith.constant 0 : i32
    %10 = arith.cmpi ne, %9, %c0_i32_8 : i32
    scf.if %10 {
      %c0_9 = arith.constant 0 : index
      %c0_10 = arith.constant 0 : index
      %11 = vector.load %arg5[%c0_9, %c0_10] : memref<2x32xf32, #tpu.memory_space<vmem>>, vector<2x32xf32>
      %cst_11 = arith.constant 1.250000e-01 : f32
      %12 = vector.broadcast %cst_11 : f32 to vector<2x32xf32>
      %13 = arith.mulf %11, %12 : vector<2x32xf32>
      %c0_12 = arith.constant 0 : index
      %c0_13 = arith.constant 0 : index
      %14 = vector.load %arg4[%c0_12, %c0_13] : memref<2x32xf32, #tpu.memory_space<vmem>>, vector<2x32xf32>
      tpu.vector_store %arg4[%c0_12, %c0_13], %13 {strides = array<i32>} : memref<2x32xf32, #tpu.memory_space<vmem>>, vector<2x32xf32>,
    } else {
    }
    return
  }
  func.func @transform_0(%arg0: i32, %arg1: i32, %arg2: i32) -> (i32, i32, i32) {
    %c0_i32 = arith.constant 0 : i32
    return %arg0, %arg2, %arg1 : i32, i32, i32
  }
  func.func @transform_1(%arg0: i32, %arg1: i32, %arg2: i32) -> (i32, i32) {
    %c0_i32 = arith.constant 0 : i32
    return %arg0, %arg1 : i32, i32
  }
}

</mosaic_0001>

<bundles_post_ra>
// kernel: tpu_custom_call.1
= control target key start
LH: loop header
LB: loop body
LE: loop exit
PB: predicated region body
PF: predicated region fallthrough
CT: control target
= control target key end

     0   :  { %6 = vsyncpa [#allocation4], 0  ;;  %s149_s0 = inlined_call_operand.hbm [shape: f32[2,8,32], index: 0, kind: input, shape index: {}]   ;;  %s150_s1 = inlined_call_operand.hbm [shape: f32[2,32], index: 1, kind: output, shape index: {}]  }
   0x1   :  { %7 = vsyncpa [#allocation5], 0  ;;  %s125_s6 = smov [#allocation3]  }
   0x2   :  { %s13_s7 = sshll.u32 %s125_s6, 4  ;;  %s14_s7 = int_to_ptr.vmem [resolvable:$true] %s13_s7 }
   0x3   :  { %s89_s8 = scalar_lea.vmem %s14_s7, 256  ;;  %p94_p1 = scmp.lt.s32.totalorder %s14_s7, %s14_s7 }
   0x4   :  { %p90_p0 = scmp.ne.s32.totalorder %s14_s7, %s89_s8  ;;  %p95_p2 = scmp.lt.s32.totalorder %s89_s8, %s89_s8 }
   0x6   :  { %p96_p3 = por %p95_p2, %p94_p1 }
   0x8   :  { %p97_p4 = pnand %p96_p3, %p90_p0 }
   0xa   :  { %100 = shalt.err (!%p97_p4)
}
   0xb   :  { %s126_s9 = smov 128   ;;  %s127_s10 = smov 8  }
   0xc   :  { %19 = dma.hbm_to_vmem [thread:$0]  %s149_s0, 256, %s14_s7, [#allocation4], %s126_s9, %s126_s9, %s127_s10  }
   0xd   :  { %121 = dma.done.wait [#allocation4], 256  }
   0xe   :  { %122 = vsyncadd [#allocation4], 4294967040  ;;  %vm27_vm0 = vcmask 254976   ;;  %v128_v0 = vmov 0.0   ;;  %vm32_vm1 = vcmask 261120   ;;  %v30_v1 = vld [vmem:[#allocation3] sm:$0xff] }
   0xf   :  { %28 = vst.msk [vmem:[#allocation2] sm:$0x3] %vm27_vm0, %v128_v0  ;;  %v31_v2 = vld [vmem:[#allocation3 + $0x8] sm:$0xff]  ;;  %v33_v3 = vsel %vm32_vm1, %v30_v1, 0.0  ;;  %vm49_vm2 = vcmask 1041409   ;;  %s129_s0 = smov [#allocation6]  }
  0x10   :  { %v40_v4 = vsel %vm32_vm1, %v31_v2, 0.0  ;;  %v34_v5 = vrot.slane %v33_v3, 4  ;;  %s67_s13 = sshll.u32 %s129_s0, 4  ;;  %s68_s13 = int_to_ptr.vmem [resolvable:$true] %s67_s13 }
  0x11   :  { %v41_v6 = vrot.slane %v40_v4, 4  ;;  %s101_s14 = scalar_lea.vmem %s68_s13, 32  ;;  %p106_p6 = scmp.lt.s32.totalorder %s68_s13, %s68_s13 }
  0x12   :  { %v35_v7 = vadd.f32 %v34_v5, %v33_v3  ;;  %p102_p5 = scmp.ne.s32.totalorder %s68_s13, %s101_s14  ;;  %p107_p7 = scmp.lt.s32.totalorder %s101_s14, %s101_s14 }
  0x13   :  { %v42_v8 = vadd.f32 %v41_v6, %v40_v4 }
  0x14   :  { %v36_v9 = vrot.slane %v35_v7, 2  ;;  %p108_p8 = por %p107_p7, %p106_p6 }
  0x15   :  { %v43_v10 = vrot.slane %v42_v8, 2 }
  0x16   :  { %v37_v11 = vadd.f32 %v36_v9, %v35_v7  ;;  %v29_v15 = vld [vmem:[#allocation2] sm:$0x3]  ;;  %p109_p9 = pnand %p108_p8, %p102_p5 }
  0x17   :  { %v44_v12 = vadd.f32 %v43_v10, %v42_v8 }
  0x18   :  { %v38_v13 = vrot.slane %v37_v11, 1 }
  0x19   :  { %v45_v14 = vrot.slane %v44_v12, 1 }
  0x1a   :  { %v39_v16 = vadd.f32 %v38_v13, %v37_v11 }
  0x1b   :  { %v46_v17 = vadd.f32 %v45_v14, %v44_v12 }
  0x1d   :  { %v50_v18 = vsel %vm49_vm2, %v46_v17, %v39_v16 }
  0x1e   :  { %v52_v19 = vadd.f32 %v50_v18, %v29_v15 }
  0x20   :  { %54 = vst.msk [vmem:[#allocation2] sm:$0x3] %vm27_vm0, %v52_v19 }
  0x27   :  { %v58_v20 = vld [vmem:[#allocation2] sm:$0x3] }
  0x28   :  { %v59_v21 = vmul.f32 0.125, %v58_v20 }
  0x2a   :  { %60 = vst.msk [vmem:[#allocation6] sm:$0x3] %vm27_vm0, %v59_v21 }
  0x2b   :  { %112 = shalt.err (!%p109_p9)
}
  0x2c   :  { %70 = dma.vmem_to_hbm [thread:$0]  %s68_s13, 32, %s150_s1, [#allocation5]  }
  0x2d   :  { %123 = dma.done.wait [#allocation5], 32  }
  0x2e   :  { %124 = vsyncadd [#allocation5], 4294967264 }
  0x2f   :  { %74 = vsyncpa [#allocation4], 1 }
  0x30   :  { %75 = vsyncpa [#allocation5], 1 }

</bundles_post_ra>
